<compile_context>
chip_gen: v5e
topology: v5e:2x2
jax: 0.10.0
libtpu: 0.0.40
codegen_flags: <defaults>
</compile_context>

<pallas_src>
import jax
import jax.numpy as jnp
from jax.experimental import pallas as pl
from jax.experimental.pallas import tpu as pltpu

_LANE = 128
_TARGET_BLOCK_BYTES = 8 * 1024 * 1024   # ~8 MiB per block, regardless of dtype
_VMEM_LIMIT_BYTES = 40 * 1024 * 1024    # 2 in + 2 out x 8 MiB buffers + headroom


def _round_up(x, m):
    return ((x + m - 1) // m) * m


def _num_tensorcores():
    """Best-effort TensorCore-per-chip count (v7x has 2). Fully guarded."""
    try:
        info = pltpu.get_tpu_info()
        for attr in ("num_tensorcores", "tensorcores_per_chip", "num_cores_per_chip"):
            v = getattr(info, attr, None)
            if isinstance(v, int) and 1 <= v <= 8:
                return v
        ver = str(getattr(info, "chip_version", "")).lower()
        if "v7" in ver or "7x" in ver:
            return 2
    except Exception:
        pass
    return 1


def _dimension_semantics(num_blocks):
    # Only CORE_PARALLEL actually splits a grid axis across TensorCores; plain
    # "parallel" vs "arbitrary" barely changes codegen.  Use it when the chip
    # has >1 TC and there is more than one block to split.
    if _num_tensorcores() > 1 and num_blocks >= 2:
        return (pltpu.CORE_PARALLEL,)
    return ("parallel",)


def _neg_scale_kernel(neg_alpha_ref, g_ref, o_ref):
    # One native-dtype vmul per block: grad_in = (-alpha) * grad_out.
    # The f32 scalar from SMEM is cast once to the grad dtype (native bf16
    # multiply on v6e/v7x; identical f32 path for f32 grads).
    o_ref[...] = g_ref[...] * neg_alpha_ref[0].astype(o_ref.dtype)


def _neg_scale_pallas(slab, neg_alpha):
    """slab: [rows, 128] lane-dense view of the grad; neg_alpha: (1,) f32."""
    rows = slab.shape[0]
    itemsize = jnp.dtype(slab.dtype).itemsize

    # Block size in BYTES, not rows: every dtype gets the same ~8 MiB block.
    max_block_rows = max(32, (_TARGET_BLOCK_BYTES // (_LANE * itemsize)) // 32 * 32)
    block_rows = min(max_block_rows, _round_up(rows, 32))
    grid = (pl.cdiv(rows, block_rows),)

    n_elems = rows * _LANE
    cost = pl.CostEstimate(flops=n_elems, transcendentals=0,
                           bytes_accessed=2 * n_elems * itemsize)

    return pl.pallas_call(
        _neg_scale_kernel,
        out_shape=jax.ShapeDtypeStruct((rows, _LANE), slab.dtype),
        grid_spec=pl.GridSpec(
            grid=grid,
            in_specs=[
                pl.BlockSpec(memory_space=pltpu.MemorySpace.SMEM),  # -alpha (f32 scalar)
                pl.BlockSpec((block_rows, _LANE), lambda i: (i, 0)),
            ],
            out_specs=pl.BlockSpec((block_rows, _LANE), lambda i: (i, 0)),
        ),
        input_output_aliases={1: 0},   # scale the grad in place (donate slab)
        cost_estimate=cost,
        compiler_params=pltpu.CompilerParams(
            dimension_semantics=_dimension_semantics(grid[0]),
            vmem_limit_bytes=_VMEM_LIMIT_BYTES,
        ),
    )(neg_alpha, slab)


def _neg_scale(g, alpha):
    """grad_input = -alpha * grad_output (Pallas streaming kernel)."""
    orig_shape, orig_dtype = g.shape, g.dtype
    neg_alpha = (-jnp.asarray(alpha, jnp.float32)).reshape(1)

    flat = g.reshape(-1)
    n = flat.shape[0]
    rows = n // _LANE
    n_main = rows * _LANE

    if rows == 0:
        # Tiny tensor (< 128 elements): a kernel launch is pure overhead.
        return (flat.astype(jnp.float32) * neg_alpha[0]).astype(orig_dtype).reshape(orig_shape)

    main = flat if n_main == n else flat[:n_main]
    out_flat = _neg_scale_pallas(main.reshape(rows, _LANE), neg_alpha).reshape(-1)

    if n_main != n:
        # Ragged (<128-element) tail: scale with plain jnp — no full-tensor
        # pad / slice round trip through HBM.
        tail = (flat[n_main:].astype(jnp.float32) * neg_alpha[0]).astype(orig_dtype)
        out_flat = jnp.concatenate([out_flat, tail])

    return out_flat.reshape(orig_shape)


@jax.custom_vjp
def rev_grad(x, alpha):
    # Forward is identity: no kernel, no HBM traffic.
    return x


def _rev_grad_fwd(x, alpha):
    return x, (alpha,)


def _rev_grad_bwd(res, g):
    (alpha,) = res
    # Zero cotangent for alpha (it takes no gradient, mirroring the PyTorch Function).
    return (_neg_scale(g, alpha), jnp.zeros_like(alpha))


rev_grad.defvjp(_rev_grad_fwd, _rev_grad_bwd)


class RevGrad:
    """JAX/Pallas equivalent of the PyTorch RevGrad module (no parameters)."""

    def __init__(self, alpha=1.0):
        self._alpha = jnp.float32(alpha)

    def __call__(self, x):
        return rev_grad(x, self._alpha)


if __name__ == "__main__":
    key = jax.random.PRNGKey(0)
    # NCHW input, consistent with conv-style tensors in AEC-RetinaNet.
    x = jax.random.normal(key, (2, 4, 16, 16), dtype=jnp.float32)

    layer = RevGrad(alpha=1.0)

    # Forward: identity (no Pallas kernel, returns the input unchanged).
    y = jax.block_until_ready(layer(x))
    assert y.shape == x.shape and y.dtype == x.dtype
    assert jnp.allclose(y, x), "forward is not identity"

    # Backward (f32, 128-aligned): gradient reversal via the Pallas kernel.
    g = jax.block_until_ready(jax.grad(lambda t: jnp.sum(layer(t) * 2.0))(x))
    assert jnp.allclose(g, -2.0 * jnp.ones_like(x)), "backward is not -alpha*grad (f32)"

    # Backward (bf16): exercises the byte-sized block + native-dtype multiply.
    xb = x.astype(jnp.bfloat16)
    gb = jax.block_until_ready(jax.grad(lambda t: jnp.sum(layer(t).astype(jnp.float32) * 2.0))(xb))
    assert jnp.allclose(gb.astype(jnp.float32), -2.0), "backward is not -alpha*grad (bf16)"

    # Backward (ragged size, not a multiple of 128): exercises the tail path.
    xr = jax.random.normal(key, (2, 5, 31), dtype=jnp.float32)  # 310 elements
    gr = jax.block_until_ready(jax.grad(lambda t: jnp.sum(layer(t) * 3.0))(xr))
    assert jnp.allclose(gr, -3.0 * jnp.ones_like(xr)), "backward is not -alpha*grad (ragged)"

    print("KERNEL_OK")
</pallas_src>

<mosaic_0001>
module attributes {stable_mosaic.version = 11 : i64} {
  func.func @_neg_scale_kernel(%arg0: i32, %arg1: memref<1xf32, #tpu.memory_space<smem>>, %arg2: memref<32x128xf32, #tpu.memory_space<vmem>>, %arg3: memref<32x128xf32, #tpu.memory_space<vmem>>) attributes {dimension_semantics = [#tpu.dimension_semantics<parallel>], iteration_bounds = array<i64: 1>, scalar_prefetch = 0 : i64, scratch_operands = 0 : i64, tpu.core_type = #tpu.core_type<tc>, window_params = [{transform_indices = @transform_0, window_bounds = array<i64: 1>}, {transform_indices = @transform_1, window_bounds = array<i64: 32, 128>}, {transform_indices = @transform_2, window_bounds = array<i64: 32, 128>}]} {
    %c0 = arith.constant 0 : index
    %c0_0 = arith.constant 0 : index
    %0 = vector.load %arg2[%c0, %c0_0] : memref<32x128xf32, #tpu.memory_space<vmem>>, vector<32x128xf32>
    %c0_1 = arith.constant 0 : index
    %1 = memref.load %arg1[%c0_1] : memref<1xf32, #tpu.memory_space<smem>>
    %2 = vector.broadcast %1 : f32 to vector<32x128xf32>
    %3 = arith.mulf %0, %2 : vector<32x128xf32>
    %c0_2 = arith.constant 0 : index
    %c0_3 = arith.constant 0 : index
    %4 = vector.load %arg3[%c0_2, %c0_3] : memref<32x128xf32, #tpu.memory_space<vmem>>, vector<32x128xf32>
    tpu.vector_store %arg3[%c0_2, %c0_3], %3 {strides = array<i32>} : memref<32x128xf32, #tpu.memory_space<vmem>>, vector<32x128xf32>,
    return
  }
  func.func @transform_0(%arg0: i32) -> i32 {
    %c0_i32 = arith.constant 0 : i32
    %c0_i32_0 = arith.constant 0 : i32
    return %c0_i32 : i32
  }
  func.func @transform_1(%arg0: i32) -> (i32, i32) {
    %c0_i32 = arith.constant 0 : i32
    %c0_i32_0 = arith.constant 0 : i32
    return %arg0, %c0_i32 : i32, i32
  }
  func.func @transform_2(%arg0: i32) -> (i32, i32) {
    %c0_i32 = arith.constant 0 : i32
    %c0_i32_0 = arith.constant 0 : i32
    return %arg0, %c0_i32 : i32, i32
  }
}

</mosaic_0001>

<bundles_post_ra>
// kernel: tpu_custom_call.1
= control target key start
LH: loop header
LB: loop body
LE: loop exit
PB: predicated region body
PF: predicated region fallthrough
CT: control target
= control target key end

     0   :  { %8 = vsyncpa [#allocation4], 0  ;;  %s146_s0 = inlined_call_operand.<no memory space> [shape: f32[1], index: 0, kind: input, shape index: {}]   ;;  %s147_s1 = inlined_call_operand.hbm [shape: f32[16,128], index: 1, kind: input, shape index: {}, may-alias: {1,2}]   ;;  %s148_s2 = inlined_call_operand.hbm [shape: f32[16,128], index: 2, kind: output, shape index: {}, may-alias: {1,2}]  }
   0x1   :  { %9 = vsyncpa [#allocation5], 0 }
   0x2   :  { %15 = vsyncadd [#allocation4], 256  ;;  %s16_s11 = sshll.u32 %s147_s1, 4  ;;  %s118_s12 = smov [#allocation3]   ;;  %s17_s11 = int_to_ptr.hbm [resolvable:$true] %s16_s11 }
   0x3   :  { %s18_s13 = sshll.u32 %s118_s12, 4  ;;  %s119_s14 = smov 128   ;;  %s19_s13 = int_to_ptr.vmem [resolvable:$true] %s18_s13 }
   0x4   :  { %s120_s15 = smov 8  }
   0x5   :  { %24 = dma.hbm_to_vmem [thread:$0]  %s17_s11, 256, %s19_s13, [#allocation4], %s119_s14, %s119_s14, %s120_s15  }
   0x6   :  { %114 = dma.done.wait [#allocation4], 512  }
   0x7   :  { %115 = vsyncadd [#allocation4], 4294966784  ;;  %v34_v0 = vstv %s146_s0  ;;  %v29_v1 = vld [vmem:[#allocation3] sm:$0xff]  ;;  %v30_v2 = vld [vmem:[#allocation3 + $0x8] sm:$0xff] }
   0x8   :  { %v31_v3 = vld [vmem:[#allocation3 + $0x10] sm:$0xff]  ;;  %v35_v4 = vmul.f32 %v34_v0, %v29_v1  ;;  %v36_v5 = vmul.f32 %v34_v0, %v30_v2  ;;  %v32_v7 = vld [vmem:[#allocation3 + $0x18] sm:$0xff] }
   0x9   :  { %v37_v6 = vmul.f32 %v34_v0, %v31_v3  ;;  %v38_v8 = vmul.f32 %v34_v0, %v32_v7 }
   0xa   :  { %39 = vst [vmem:[#allocation6] sm:$0xff] %v35_v4 }
   0xb   :  { %40 = vst [vmem:[#allocation6 + $0x8] sm:$0xff] %v36_v5 }
   0xc   :  { %41 = vst [vmem:[#allocation6 + $0x10] sm:$0xff] %v37_v6 }
   0xd   :  { %42 = vst [vmem:[#allocation6 + $0x18] sm:$0xff] %v38_v8 }
   0xe   :  { %46 = vsyncadd [#allocation5], 256  ;;  %s49_s19 = sshll.u32 %s148_s2, 4  ;;  %s121_s20 = smov [#allocation6]   ;;  %s50_s19 = int_to_ptr.hbm [resolvable:$true] %s49_s19 }
   0xf   :  { %s47_s21 = sshll.u32 %s121_s20, 4  ;;  %s48_s21 = int_to_ptr.vmem [resolvable:$true] %s47_s21 }
  0x10   :  { %55 = dma.vmem_to_hbm [thread:$0]  %s48_s21, 256, %s50_s19, [#allocation5], %s119_s14, %s119_s14, %s120_s15  }
  0x11   :  { %116 = dma.done.wait [#allocation5], 512  }
  0x12   :  { %117 = vsyncadd [#allocation5], 4294966784 }
  0x13   :  { %60 = vsyncpa [#allocation4], 1 }
  0x14   :  { %61 = vsyncpa [#allocation5], 1 }

</bundles_post_ra>
